<compile_context>
chip_gen: v7x
topology: tpu7x:2x2x1
jax: 0.10.0
libtpu: 0.0.40
codegen_flags: <defaults>
</compile_context>

<pallas_src>
import functools

import jax
import jax.numpy as jnp
from jax.experimental import pallas as pl
from jax.experimental.pallas import tpu as pltpu

# ---------------------------------------------------------------------------
# "function_set" — elementwise unary functions (static, known at trace time).
# Index 0: identity, 1: sin, 2: cos, 3: square.
# ---------------------------------------------------------------------------
FUNCTION_SET = (
    lambda t: t,          # identity
    jnp.sin,
    jnp.cos,
    lambda t: t * t,      # square
)

# node_info = (u, v)
U = 4
V = 2
OUTPUT_SIZE = U + 2 * V            # rows of the original torch-layout W
UNARY_FUNCS = (1, 2, 0, 3)         # FUNCTION_SET index per unary node

HALF = 64                          # lane offset between binary 'a' and 'b' operands
N_PAD = 2 * HALF                   # lane-dense width of the in-kernel slab (128)

# TODO(synk): SafeIdentityFunction / SafePower special-case branches of the torch
# forward are not implemented (those classes are not defined in the reference);
# only the generic elementwise-unary path is reproduced. Bias `b` is unused by
# Connected.forward and therefore not modeled.


def _round_up(a, m):
    return -(-a // m) * m


def _srnet_kernel(x_ref, w_ref, o_ref, *, u, v, unary_funcs, half):
    """One batch tile: MXU matmul + vectorized unary select + binary products."""
    x = x_ref[...].astype(jnp.float32)          # (TB, D)
    w = w_ref[...].astype(jnp.float32)          # (N_PAD, D), rows pre-permuted/padded

    # lin = x @ w.T with no in-kernel transpose: contract last dims of both.
    lin = jax.lax.dot_general(
        x, w,
        dimension_numbers=(((1,), (1,)), ((), ())),
        preferred_element_type=jnp.float32)     # (TB, N_PAD) — lane dense

    col = jax.lax.broadcasted_iota(jnp.int32, lin.shape, 1)
    out = jnp.zeros_like(lin)

    # Unary nodes: evaluate each DISTINCT function once over the whole slab and
    # select its columns with lane masks (full-vreg VPU ops; <=1 EUP push per fn).
    func_cols = {}
    for i, fidx in enumerate(unary_funcs):
        func_cols.setdefault(fidx, []).append(i)
    for fidx, cols in func_cols.items():
        fvals = FUNCTION_SET[fidx](lin)
        mask = functools.reduce(jnp.logical_or, [col == c for c in cols])
        out = jnp.where(mask, fvals, out)

    # Binary nodes: 'a' operands sit in lanes [u, u+v), 'b' operands in lanes
    # [half+u, half+u+v).  A half-rotation (shift == N_PAD/2, so rotation
    # direction is irrelevant) lines each b up under its a; one full-vreg mul.
    if v > 0:
        lin_rot = pltpu.roll(lin, half, 1)
        prod = lin * lin_rot
        bin_mask = jnp.logical_and(col >= u, col < u + v)
        out = jnp.where(bin_mask, prod, out)

    # Single lane-dense (TB, 128) store; wrapper slices back to (B, u+v).
    o_ref[...] = out.astype(o_ref.dtype)


def srnet_layer(x, W, *, u=U, v=V, unary_funcs=UNARY_FUNCS, max_batch_tile=512):
    """Pallas wrapper. x: (B, D), W: (u+2v, D) torch-Linear layout -> (B, u+v)."""
    B, D = x.shape
    O, D2 = W.shape
    assert D == D2 and O == u + 2 * v
    # TODO(synk): widen N_PAD (multiple of 128) if node_info ever exceeds these.
    assert u + v <= HALF and O <= N_PAD

    # ---- host/trace-time weight layout: permute rows, pad to lane-dense slab.
    Wp = jnp.zeros((N_PAD, D), W.dtype)
    Wp = Wp.at[:u, :].set(W[:u])
    if v > 0:
        a_rows = jnp.asarray([u + 2 * k for k in range(v)], dtype=jnp.int32)
        b_rows = jnp.asarray([u + 2 * k + 1 for k in range(v)], dtype=jnp.int32)
        Wp = Wp.at[u:u + v, :].set(W[a_rows])
        Wp = Wp.at[HALF + u:HALF + u + v, :].set(W[b_rows])

    # ---- batch tiling: TB multiple of 8 (f32 sublane), capped at 512 rows.
    TB = min(max_batch_tile, _round_up(B, 8))
    B_pad = _round_up(B, TB)
    x_p = x if B_pad == B else jnp.pad(x, ((0, B_pad - B), (0, 0)))

    kernel = functools.partial(_srnet_kernel, u=u, v=v,
                               unary_funcs=tuple(unary_funcs), half=HALF)
    out_padded = pl.pallas_call(
        kernel,
        out_shape=jax.ShapeDtypeStruct((B_pad, N_PAD), x.dtype),
        grid=(B_pad // TB,),
        in_specs=[
            pl.BlockSpec((TB, D), lambda i: (i, 0)),        # batch-tiled x
            pl.BlockSpec((N_PAD, D), lambda i: (0, 0)),     # W resident across grid
        ],
        out_specs=pl.BlockSpec((TB, N_PAD), lambda i: (i, 0)),  # lane-dense store
        compiler_params=pltpu.CompilerParams(
            dimension_semantics=("parallel",)),             # megacore on v7x
    )(x_p, Wp)
    return out_padded[:B, :u + v]


def srnet_layer_ref(x, W, *, u=U, v=V, unary_funcs=UNARY_FUNCS):
    """Pure-JAX reference mirroring the torch forward (original W layout)."""
    lin = x @ W.T
    cols = [FUNCTION_SET[unary_funcs[i]](lin[:, i:i + 1]) for i in range(u)]
    for k in range(v):
        cols.append(lin[:, u + 2 * k:u + 2 * k + 1] * lin[:, u + 2 * k + 1:u + 2 * k + 2])
    return jnp.concatenate(cols, axis=1)


if __name__ == "__main__":
    key = jax.random.PRNGKey(0)
    k_x, k_w, k_x2 = jax.random.split(key, 3)

    B, D = 8, 16                      # batch, input_size
    x = jax.random.normal(k_x, (B, D), dtype=jnp.float32)
    # W: (output_size, input_size) = (u + 2v, D); synthetic ~ N(0, 0.3^2).
    W = 0.3 * jax.random.normal(k_w, (OUTPUT_SIZE, D), dtype=jnp.float32)

    out = jax.block_until_ready(srnet_layer(x, W))
    ref = srnet_layer_ref(x, W)
    assert out.shape == (B, U + V), out.shape
    assert jnp.allclose(out, ref, rtol=1e-5, atol=1e-5), "mismatch vs reference (small B)"

    # Larger batch: exercises batch grid (grid > 1), row padding, parallel dim.
    B2 = 1030
    x2 = jax.random.normal(k_x2, (B2, D), dtype=jnp.float32)
    out2 = jax.block_until_ready(srnet_layer(x2, W))
    ref2 = srnet_layer_ref(x2, W)
    assert out2.shape == (B2, U + V), out2.shape
    assert jnp.allclose(out2, ref2, rtol=1e-5, atol=1e-5), "mismatch vs reference (large B)"

    print("KERNEL_OK")
</pallas_src>

<mosaic_0001>
module attributes {stable_mosaic.version = 11 : i64} {
  func.func @_srnet_kernel(%arg0: i32, %arg1: memref<8x16xf32, #tpu.memory_space<vmem>>, %arg2: memref<128x16xf32, #tpu.memory_space<vmem>>, %arg3: memref<8x128xf32, #tpu.memory_space<vmem>>) attributes {dimension_semantics = [#tpu.dimension_semantics<parallel>], iteration_bounds = array<i64: 1>, scalar_prefetch = 0 : i64, scratch_operands = 0 : i64, tpu.core_type = #tpu.core_type<tc>, window_params = [{transform_indices = @transform_0, window_bounds = array<i64: 8, 16>}, {pipeline_mode = #tpu.pipeline_mode<synchronous>, transform_indices = @transform_1, window_bounds = array<i64: 128, 16>}, {transform_indices = @transform_2, window_bounds = array<i64: 8, 128>}]} {
    %c0 = arith.constant 0 : index
    %c0_0 = arith.constant 0 : index
    %0 = vector.load %arg1[%c0, %c0_0] : memref<8x16xf32, #tpu.memory_space<vmem>>, vector<8x16xf32>
    %c0_1 = arith.constant 0 : index
    %c0_2 = arith.constant 0 : index
    %1 = vector.load %arg2[%c0_1, %c0_2] : memref<128x16xf32, #tpu.memory_space<vmem>>, vector<128x16xf32>
    %cst = arith.constant dense<0.000000e+00> : vector<8x128xf32>
    %2 = tpu.matmul %0, %1, %cst {dimension_numbers = #tpu.dot_dimension_numbers<[1], [1], [0], [0], [0, 0, 1, 0], [], []>} : vector<8x16xf32>, vector<128x16xf32>, vector<8x128xf32> -> vector<8x128xf32>
    %3 = tpu.iota {dimensions = array<i32: 1>} : vector<8x128xi32>
    %cst_3 = arith.constant 0.000000e+00 : f32
    %4 = vector.broadcast %cst_3 : f32 to vector<8x128xf32>
    %5 = math.sin %2 : vector<8x128xf32>
    %c0_i32 = arith.constant 0 : i32
    %6 = vector.broadcast %c0_i32 : i32 to vector<8x128xi32>
    %7 = arith.cmpi eq, %3, %6 : vector<8x128xi32>
    %8 = arith.select %7, %5, %4 : vector<8x128xi1>, vector<8x128xf32>
    %9 = math.cos %2 : vector<8x128xf32>
    %c1_i32 = arith.constant 1 : i32
    %10 = vector.broadcast %c1_i32 : i32 to vector<8x128xi32>
    %11 = arith.cmpi eq, %3, %10 : vector<8x128xi32>
    %12 = arith.select %11, %9, %8 : vector<8x128xi1>, vector<8x128xf32>
    %c2_i32 = arith.constant 2 : i32
    %13 = vector.broadcast %c2_i32 : i32 to vector<8x128xi32>
    %14 = arith.cmpi eq, %3, %13 : vector<8x128xi32>
    %15 = arith.select %14, %2, %12 : vector<8x128xi1>, vector<8x128xf32>
    %16 = arith.mulf %2, %2 : vector<8x128xf32>
    %c3_i32 = arith.constant 3 : i32
    %17 = vector.broadcast %c3_i32 : i32 to vector<8x128xi32>
    %18 = arith.cmpi eq, %3, %17 : vector<8x128xi32>
    %19 = arith.select %18, %16, %15 : vector<8x128xi1>, vector<8x128xf32>
    %c64_i32 = arith.constant 64 : i32
    %20 = tpu.dynamic_rotate %2 by %c64_i32 dim 1 : vector<8x128xf32>, i32 -> vector<8x128xf32>
    %21 = arith.mulf %2, %20 : vector<8x128xf32>
    %c4_i32 = arith.constant 4 : i32
    %22 = vector.broadcast %c4_i32 : i32 to vector<8x128xi32>
    %23 = arith.cmpi sge, %3, %22 : vector<8x128xi32>
    %c6_i32 = arith.constant 6 : i32
    %24 = vector.broadcast %c6_i32 : i32 to vector<8x128xi32>
    %25 = arith.cmpi slt, %3, %24 : vector<8x128xi32>
    %26 = arith.andi %23, %25 : vector<8x128xi1>
    %27 = arith.select %26, %21, %19 : vector<8x128xi1>, vector<8x128xf32>
    %c0_4 = arith.constant 0 : index
    %c0_5 = arith.constant 0 : index
    %28 = vector.load %arg3[%c0_4, %c0_5] : memref<8x128xf32, #tpu.memory_space<vmem>>, vector<8x128xf32>
    tpu.vector_store %arg3[%c0_4, %c0_5], %27 {strides = array<i32>} : memref<8x128xf32, #tpu.memory_space<vmem>>, vector<8x128xf32>,
    return
  }
  func.func @transform_0(%arg0: i32) -> (i32, i32) {
    %c0_i32 = arith.constant 0 : i32
    %c0_i32_0 = arith.constant 0 : i32
    return %arg0, %c0_i32 : i32, i32
  }
  func.func @transform_1(%arg0: i32) -> (i32, i32) {
    %c0_i32 = arith.constant 0 : i32
    %c0_i32_0 = arith.constant 0 : i32
    %c0_i32_1 = arith.constant 0 : i32
    return %c0_i32, %c0_i32_0 : i32, i32
  }
  func.func @transform_2(%arg0: i32) -> (i32, i32) {
    %c0_i32 = arith.constant 0 : i32
    %c0_i32_0 = arith.constant 0 : i32
    return %arg0, %c0_i32 : i32, i32
  }
}

</mosaic_0001>

<bundles_post_ra>
// kernel: tpu_custom_call.1
= control target key start
LH: loop header
LB: loop body
LE: loop exit
PB: predicated region body
PF: predicated region fallthrough
CT: control target
= control target key end

     0   :  { %vm29_vm0 = vcmask 130048   ;;  %v543_v2 = vmov 0.0|0.0   ;;  %vm544_vm2 = vmmov 0   ;;  %v545_v5 = vmov 0.0   ;;  %s681_s0 = inlined_call_operand.vmem [shape: f32[8,16], index: 0, kind: input, shape index: {}]   ;;  %s682_s1 = inlined_call_operand.vmem [shape: f32[128,16], index: 1, kind: input, shape index: {}]   ;;  %s683_s2 = inlined_call_operand.hbm [shape: f32[8,128], index: 2, kind: output, shape index: {}]  }
   0x1   :  { %v13_v0 = vld [vmem:[%s682_s1] sm:$0xff]  ;;  %v14_v1 = vld [vmem:[%s682_s1 + $0x8] sm:$0xff]  ;;  %468 = vmatprep.subr.bf16.mxu0 %v543_v2  ;;  %vm577_vm1 = vmpackc.low %vm29_vm0, %vm29_vm0  ;;  %465 = vmatprep.mubr.msk.f32.mxu0 %vm544_vm2, %v545_v5 }
   0x2   :  { %v469_v3 = vpack.c.bf16 %v14_v1, %v13_v0  ;;  %v15_v6 = vld [vmem:[%s682_s1 + $0x10] sm:$0xff]  ;;  %v16_v7 = vld [vmem:[%s682_s1 + $0x18] sm:$0xff] }
   0x4   :  { %471 = vmatpush3.bf16.xpose.msk.msra.mxu0 %vm577_vm1, %v469_v3 }
   0x5   :  { %472 = vmatprep.subr.bf16.mxu0 %v543_v2 }
   0x6   :  { %7 = vsyncpa [#allocation3], 0  ;;  %v473_v8 = vpack.c.bf16 %v16_v7, %v15_v6  ;;  %v17_v9 = vld [vmem:[%s682_s1 + $0x20] sm:$0xff]  ;;  %v18_v10 = vld [vmem:[%s682_s1 + $0x28] sm:$0xff]  ;;  %s546_s15 = smov 64  }
   0x7   :  { %v477_v11 = vpack.c.bf16 %v18_v10, %v17_v9  ;;  %v19_v12 = vld [vmem:[%s682_s1 + $0x30] sm:$0xff]  ;;  %v20_v13 = vld [vmem:[%s682_s1 + $0x38] sm:$0xff]  ;;  %v21_v15 = vld [vmem:[%s682_s1 + $0x40] sm:$0xff]  ;;  %v547_v41 = vmov 2102212464  }
   0x8   :  { %v481_v14 = vpack.c.bf16 %v20_v13, %v19_v12  ;;  %v22_v16 = vld [vmem:[%s682_s1 + $0x48] sm:$0xff]  ;;  %v23_v18 = vld [vmem:[%s682_s1 + $0x50] sm:$0xff]  ;;  %v24_v19 = vld [vmem:[%s682_s1 + $0x58] sm:$0xff]  ;;  %v548_v43 = vmov 920167782  }
   0x9   :  { %v485_v17 = vpack.c.bf16 %v22_v16, %v21_v15  ;;  %v489_v20 = vpack.c.bf16 %v24_v19, %v23_v18  ;;  %v25_v21 = vld [vmem:[%s682_s1 + $0x60] sm:$0xff]  ;;  %v26_v22 = vld [vmem:[%s682_s1 + $0x68] sm:$0xff]  ;;  %v27_v24 = vld [vmem:[%s682_s1 + $0x70] sm:$0xff]  ;;  %v549_v47 = vmov 1326507024  }
   0xa   :  { %v493_v23 = vpack.c.bf16 %v26_v22, %v25_v21  ;;  %v28_v25 = vld [vmem:[%s682_s1 + $0x78] sm:$0xff]  ;;  %v12_v27 = vld [vmem:[%s681_s0] sm:$0xff]  ;;  %v550_v49 = vmov 683565275   ;;  %v551_v51 = vmov 2475754826  }
   0xb   :  { %v497_v26 = vpack.c.bf16 %v28_v25, %v27_v24  ;;  %v552_v54 = vmov 2131351028   ;;  %s553_s0 = smov [#allocation2]  }
   0xc   :  { %475 = vmatpush3.bf16.xpose.msk.msra.mxu0 %vm577_vm1, %v473_v8  ;;  %s383_s1 = sshll.u32 %s553_s0, 4  ;;  %s384_s1 = int_to_ptr.vmem [resolvable:$true] %s383_s1 }
   0xd   :  { %476 = vmatprep.subr.bf16.mxu0 %v543_v2  ;;  %s519_s16 = scalar_lea.vmem %s384_s1, 128  ;;  %p524_p1 = scmp.lt.s32.totalorder %s384_s1, %s384_s1 }
   0xe   :  { %p520_p0 = scmp.ne.s32.totalorder %s384_s1, %s519_s16  ;;  %p525_p2 = scmp.lt.s32.totalorder %s519_s16, %s519_s16 }
  0x10   :  { %p526_p3 = por %p525_p2, %p524_p1 }
  0x12   :  { %p527_p4 = pnand %p526_p3, %p520_p0 }
  0x14   :  { %479 = vmatpush3.bf16.xpose.msk.msra.mxu0 %vm577_vm1, %v477_v11 }
  0x15   :  { %480 = vmatprep.subr.bf16.mxu0 %v543_v2 }
  0x1c   :  { %483 = vmatpush3.bf16.xpose.msk.msra.mxu0 %vm577_vm1, %v481_v14 }
  0x1d   :  { %484 = vmatprep.subr.bf16.mxu0 %v543_v2 }
  0x24   :  { %487 = vmatpush3.bf16.xpose.msk.msra.mxu0 %vm577_vm1, %v485_v17 }
  0x25   :  { %488 = vmatprep.subr.bf16.mxu0 %v543_v2 }
  0x2c   :  { %491 = vmatpush3.bf16.xpose.msk.msra.mxu0 %vm577_vm1, %v489_v20 }
  0x2d   :  { %492 = vmatprep.subr.bf16.mxu0 %v543_v2 }
  0x34   :  { %495 = vmatpush3.bf16.xpose.msk.msra.mxu0 %vm577_vm1, %v493_v23 }
  0x35   :  { %496 = vmatprep.subr.bf16.mxu0 %v543_v2 }
  0x3c   :  { %499 = vmatpush3.bf16.xpose.msk.msra.mxu0 %vm577_vm1, %v497_v26 }
  0x43   :  { %466 = vmatmul.mubr.msk.f32.vlgmr.msra.gmra.mrb[0].mxu0 %vm29_vm0, %v12_v27 }
 0x116   :  { %v643_v28 = vpop.f32.mrb[0].mxu0 }
 0x117   :  { %v156_v29 = vand.u32 2139095040, %v643_v28  ;;  %v467_v30 = vpop.f32.mrb[1].mxu0  ;;  %369 = vrot.lane.b32.xlu0 %v643_v28, %s546_s15  ;;  %v153_v31 = vand.u32 2147483647, %v643_v28  ;;  %vm155_vm10 = vcmp.lt.s32.totalorder %v643_v28, 0  ;;  %vm245_vm1 = vweird.f32 %v643_v28 }
 0x119   :  { %v157_v32 = vshrl.u32 %v156_v29, 23  ;;  %v160_v34 = vand.u32 8388607, %v153_v31  ;;  %vm154_vm11 = vcmp.le.f32.partialorder %v153_v31, 0.7853982 }
 0x11b   :  { %v408_v33 = vadd.s32 4294967169, %v157_v32  ;;  %v161_v37 = vor.u32 8388608, %v160_v34 }
 0x11d   :  { %v163_v35 = vadd.s32 1, %v408_v33  ;;  %v201_v45 = vshll.u32 %v161_v37, 8 }
 0x11f   :  { %vm164_vm3 = vcmp.gt.s32.totalorder %v163_v35, 0 }
 0x120   :  { %v165_v36 = vsel %vm164_vm3, %v163_v35, 0 }
 0x121   :  { %v167_v38 = vand.u32 31, %v165_v36  ;;  %v166_v39 = vshrl.u32 %v165_v36, 5 }
 0x123   :  { %v168_v40 = vsub.s32 32, %v167_v38  ;;  %v179_v42 = vshll.u32 %v547_v41, %v167_v38  ;;  %v182_v44 = vshll.u32 %v548_v43, %v167_v38  ;;  %v170_v50 = vshll.u32 %v550_v49, %v167_v38 }
 0x124   :  { %v173_v53 = vshll.u32 %v551_v51, %v167_v38  ;;  %v176_v56 = vshll.u32 %v552_v54, %v167_v38  ;;  %vm188_vm4 = vcmp.lt.s32.totalorder %v166_v39, 4  ;;  %vm185_vm5 = vcmp.lt.s32.totalorder %v166_v39, 1 }
 0x125   :  { %v180_v46 = vshrl.u32 %v548_v43, %v168_v40  ;;  %v183_v48 = vshrl.u32 %v549_v47, %v168_v40  ;;  %v171_v52 = vshrl.u32 %v551_v51, %v168_v40  ;;  %v174_v55 = vshrl.u32 %v552_v54, %v168_v40 }
 0x126   :  { %v177_v57 = vshrl.u32 %v547_v41, %v168_v40  ;;  %v169_v61 = vshrl.u32 %v550_v49, %v168_v40  ;;  %vm186_vm6 = vcmp.lt.s32.totalorder %v166_v39, 2  ;;  %vm187_vm7 = vcmp.lt.s32.totalorder %v166_v39, 3 }
 0x127   :  { %v181_v58 = vor.u32 %v180_v46, %v179_v42  ;;  %v184_v59 = vor.u32 %v183_v48, %v182_v44  ;;  %v172_v60 = vor.u32 %v171_v52, %v170_v50  ;;  %v175_v62 = vor.u32 %v174_v55, %v173_v53 }
 0x128   :  { %v178_v63 = vor.u32 %v177_v57, %v176_v56  ;;  %v151_v55 = vlaneseq }
 0x129   :  { %v194_v0 = vsel %vm188_vm4, %v181_v58, 920167782  ;;  %v198_v1 = vsel %vm188_vm4, %v184_v59, 1326507024  ;;  %v193_v3 = vsel %vm185_vm5, %v172_v60, %v175_v62  ;;  %v189_v6 = vsel %vm185_vm5, %v169_v61, %v172_v60 }
 0x12a   :  { %v190_v2 = vsel %vm188_vm4, %v178_v63, 2102212464  ;;  %v195_v4 = vsel %vm187_vm7, %v178_v63, %v194_v0  ;;  %v197_v5 = vsel %vm185_vm5, %v175_v62, %v178_v63  ;;  %v199_v9 = vsel %vm187_vm7, %v181_v58, %v198_v1 }
 0x12b   :  { %v191_v7 = vsel %vm187_vm7, %v175_v62, %v190_v2  ;;  %v196_v8 = vsel %vm186_vm6, %v193_v3, %v195_v4  ;;  %v200_v10 = vsel %vm186_vm6, %v197_v5, %v199_v9  ;;  %v152_v31 = vand.u32 127, %v151_v55 }
 0x12c   :  { %v650_v11 = vmul.u32.u64.low %v201_v45, %v196_v8  ;;  %v651_v12 = vmul.u32.u64.high %v201_v45, %v196_v8, %v650_v11  ;;  %v653_v13 = vmul.u32.u64.low %v201_v45, %v200_v10  ;;  %v654_v14 = vmul.u32.u64.high %v201_v45, %v200_v10, %v653_v13 }
 0x12d   :  { %v192_v15 = vsel %vm186_vm6, %v189_v6, %v191_v7  ;;  %vm257_vm3 = vcmp.eq.s32.totalorder %v152_v31, 0  ;;  %vm362_vm4 = vcmp.eq.s32.totalorder %v152_v31, 1  ;;  %vm364_vm5 = vcmp.eq.s32.totalorder %v152_v31, 2 }
 0x12e   :  { %v211_v16 = vadd.s32 1, %v651_v12  ;;  %v208_v17 = vmul.u32 %v201_v45, %v192_v15  ;;  %vm210_vm8 = vc.u32 %v654_v14, %v650_v11  ;;  %v209_v34 = vadd.s32 %v650_v11, %v654_v14 }
 0x12f   :  { %vm372_vm6 = vcmp.ge.s32.totalorder %v152_v31, 4  ;;  %vm373_vm7 = vcmp.lt.s32.totalorder %v152_v31, 6  ;;  %v366_v5 = vmul.f32 %v643_v28, %v643_v28 }
 0x130   :  { %v212_v18 = vsel %vm210_vm8, %v211_v16, %v651_v12  ;;  %vm367_vm8 = vcmp.eq.s32.totalorder %v152_v31, 3 }
 0x131   :  { %v213_v19 = vadd.s32 %v212_v18, %v208_v17 }
 0x133   :  { %v214_v20 = vadd.s32 536870912, %v213_v19 }
 0x135   :  { %v215_v21 = vshrl.u32 %v214_v20, 30 }
 0x137   :  { %v216_v22 = vshll.u32 %v215_v21, 30  ;;  %v239_v46 = vsub.s32 4, %v215_v21 }
 0x139   :  { %v217_v23 = vsub.s32 %v213_v19, %v216_v22  ;;  %v240_v47 = vsel %vm155_vm10, %v239_v46, %v215_v21 }
 0x13a   :  { %v242_v48 = vsel %vm154_vm11, 0, %v240_v47 }
 0x13b   :  { %v219_v24 = vsub.s32 0, %v217_v23  ;;  %v246_v49 = vadd.s32 3, %v242_v48  ;;  %v352_v56 = vand.u32 3, %v242_v48 }
 0x13d   :  { %v409_v25 = vmin.u32 %v219_v24, %v217_v23  ;;  %v247_v52 = vand.u32 3, %v246_v49  ;;  %vm354_vm15 = vcmp.eq.s32.totalorder %v352_v56, 0  ;;  %vm357_vm0 = vcmp.eq.s32.totalorder %v352_v56, 2 }
 0x13e   :  { %vm353_vm2 = vcmp.lt.s32.totalorder %v352_v56, 2 }
 0x13f   :  { %v221_v26 = vclz %v409_v25  ;;  %vm249_vm12 = vcmp.eq.s32.totalorder %v247_v52, 0  ;;  %vm252_vm13 = vcmp.eq.s32.totalorder %v247_v52, 2  ;;  %vm248_vm14 = vcmp.lt.s32.totalorder %v247_v52, 2 }
 0x141   :  { %v410_v27 = vadd.s32 4294967294, %v221_v26 }
 0x143   :  { %vm411_vm9 = vcmp.lt.s32.totalorder %v410_v27, 0 }
 0x144   :  { %v224_v29 = vsel %vm411_vm9, 0, %v410_v27  ;;  %vm374_vm9 = vmand %vm372_vm6, %vm373_vm7 }
 0x145   :  { %v229_v30 = vsub.s32 4294967266, %v224_v29  ;;  %v225_v33 = vsub.s32 32, %v224_v29  ;;  %v226_v37 = vshll.u32 %v217_v23, %v224_v29 }
 0x147   :  { %v230_v32 = vadd.s32 127, %v229_v30  ;;  %v227_v36 = vshrl.u32 %v209_v34, %v225_v33 }
 0x149   :  { %v231_v35 = vshll.u32 %v230_v32, 23  ;;  %v228_v39 = vor.u32 %v227_v36, %v226_v37 }
 0x14b   :  { %v232_v38 = vor.u32 4788187, %v231_v35  ;;  %v235_v41 = vcvt.s32.f32 %v228_v39 }
 0x14d   :  { %v233_v40 = vand.u32 2147483647, %v232_v38 }
 0x14f   :  { %v236_v42 = vmul.f32 %v235_v41, %v233_v40 }
 0x151   :  { %v237_v43 = vxor.u32 2147483648, %v236_v42 }
 0x153   :  { %v238_v44 = vsel %vm155_vm10, %v237_v43, %v236_v42 }
 0x154   :  { %v241_v45 = vsel %vm154_vm11, %v643_v28, %v238_v44 }
 0x155   :  { %515 = vcosq.f32 %v241_v45 }
 0x156   :  { %517 = vsinq.f32 %v241_v45 }
 0x15f   :  { %v516_v50 = vpop.eup %515 }
 0x160   :  { %v518_v51 = vpop.eup %517  ;;  %v253_v54 = vxor.u32 2147483648, %v516_v50 }
 0x161   :  { %v250_v53 = vxor.u32 2147483648, %v518_v51 }
 0x162   :  { %v254_v58 = vsel %vm252_vm13, %v253_v54, %v518_v51  ;;  %v359_v61 = vsel %vm357_vm0, %v253_v54, %v518_v51 }
 0x163   :  { %v251_v57 = vsel %vm249_vm12, %v516_v50, %v250_v53  ;;  %v356_v60 = vsel %vm354_vm15, %v516_v50, %v250_v53 }
 0x164   :  { %v255_v59 = vsel %vm248_vm14, %v251_v57, %v254_v58  ;;  %v360_v63 = vsel %vm353_vm2, %v356_v60, %v359_v61 }
 0x165   :  { %v256_v62 = vsel %vm245_vm1, nan, %v255_v59  ;;  %v361_v1 = vsel %vm245_vm1, nan, %v360_v63 }
 0x166   :  { %v258_v0 = vsel %vm257_vm3, %v256_v62, 0.0 }
 0x167   :  { %v363_v2 = vsel %vm362_vm4, %v361_v1, %v258_v0 }
 0x168   :  { %v365_v3 = vsel %vm364_vm5, %v643_v28, %v363_v2 }
 0x169   :  { %v368_v7 = vsel %vm367_vm8, %v366_v5, %v365_v3 }
 0x189   :  { %v370_v4 = vpop.permute.xlu0 %369 }
 0x18a   :  { %v371_v6 = vmul.f32 %v370_v4, %v643_v28 }
 0x18c   :  { %v375_v8 = vsel %vm374_vm9, %v371_v6, %v368_v7 }
 0x18d   :  { %376 = vst [vmem:[#allocation2] sm:$0xff] %v375_v8 }
 0x18e   :  { %530 = shalt.err (!%p527_p4)
}
 0x18f   :  { %s531_s19 = scalar_lea.hbm %s683_s2, 128 }
 0x190   :  { %p532_p5 = scmp.ne.s32.totalorder %s683_s2, %s531_s19  ;;  %p535_p6 = scmp.lt.u32.totalorder %s531_s19, %s683_s2 }
 0x192   :  { %p537_p7 = pnand %p535_p6, %p532_p5 }
 0x194   :  { %540 = shalt.err (!%p537_p7)
}
 0x195   :  { %386 = dma.vmem_to_hbm [thread:$0]  %s384_s1, 128, %s683_s2, [#allocation3]  }
 0x196   :  { %541 = dma.done.wait [#allocation3], 128  }
 0x197   :  { %542 = vsyncadd [#allocation3], 4294967168 }
 0x198   :  { %390 = vsyncpa [#allocation3], 1 }

</bundles_post_ra>
